<compile_context>
chip_gen: v7x
topology: tpu7x:2x2x1
jax: 0.10.0
libtpu: 0.0.40
codegen_flags: <defaults>
</compile_context>

<pallas_src>
import functools

import jax
import jax.numpy as jnp
from jax import lax
from jax.experimental import pallas as pl
from jax.experimental.pallas import tpu as pltpu


def _round_up(x: int, m: int) -> int:
    return -(-x // m) * m


def _vmem_capacity_bytes() -> int:
    """VMEM per TensorCore; conservative fallback (v7x = 64 MiB) if query fails."""
    try:
        return int(pltpu.get_tpu_info().vmem_capacity_bytes)
    except Exception:
        return 64 * 1024 * 1024


def _in_spec(block_shape, index_map, bufs: int) -> pl.BlockSpec:
    """Input BlockSpec with optional deeper pipelining (v5e/v6e); safe fallback."""
    if bufs > 2 and hasattr(pl, "Buffered"):
        try:
            return pl.BlockSpec(block_shape, index_map,
                                pipeline_mode=pl.Buffered(bufs))
        except TypeError:  # older/newer BlockSpec without pipeline_mode
            pass
    return pl.BlockSpec(block_shape, index_map)


def _pick_tiles(n: int, d: int, itemsize: int):
    """Choose (tile_n, tile_d, bufs) by BYTES: ~8 MiB per input block, bounded by
    the generation's VMEM budget (2 inputs x `bufs` pipeline buffers)."""
    cap = _vmem_capacity_bytes()
    bufs = 3 if cap >= 100 * 1024 * 1024 else 2          # deeper pipeline on 128 MiB parts
    sub = max(8, 32 // max(itemsize, 1))                 # sublane packing multiple
    budget = min(int(cap * 0.55), 80 << 20)              # bytes for all input buffers
    target_blk = min(8 << 20, budget // (2 * bufs))      # bytes per input block
    target_blk = max(target_blk, sub * 128 * itemsize)

    if d * itemsize * sub <= target_blk:
        # Full feature axis resident in the block (common case).
        tile_d = d
        t = (max(target_blk // (d * itemsize), sub) // sub) * sub
        if t >= n:
            if n >= 2 * sub and n * d * itemsize >= (1 << 20):
                # Megacore guard: keep >= 2 row tiles so the "parallel" axis can
                # split across both v7x TensorCores.
                tile_n = int(_round_up((n + 1) // 2, sub))
            else:
                tile_n = int(n)        # single full-extent row tile (always legal)
        else:
            tile_n = int(t)
    else:
        # Wide D: split the feature axis; stream ~target_blk bytes per step.
        tile_n = int(sub if n >= sub else n)
        tile_d = (target_blk // (sub * itemsize)) // 128 * 128
        tile_d = int(max(min(tile_d, d), 128))
    return tile_n, tile_d, bufs


def _rmse_partial_kernel(yhat_ref, y_ref, out_ref, *scratch, n_rows: int,
                         n_cols: int, inv_d: float, tile_n: int, tile_d: int,
                         n_d_tiles: int):
    """Grid step (i, j): accumulate per-row sum-of-squares for D chunk j; on the
    last D chunk write this row tile's partial sum of sqrt(mse + 1e-8) as a
    lane-dense (1, 8, 128) broadcast block."""
    i = pl.program_id(0)

    yhat = yhat_ref[...]
    y = y_ref[...]
    if yhat.dtype == jnp.bfloat16 and y.dtype == jnp.bfloat16:
        # Native bf16 VALU subtract, single f32 cast (v6e/v7x); tiny numeric
        # difference vs. casting both operands first — fine for a loss.
        diff = (yhat - y).astype(jnp.float32)
    else:
        diff = yhat.astype(jnp.float32) - y.astype(jnp.float32)
    dsq = diff * diff

    def finalize(row_ss):
        # row_ss: (tile_n, 1) per-row sum of squared errors over the FULL D.
        row_rmse = jnp.sqrt(row_ss * inv_d + 1e-08)
        if n_rows % tile_n != 0:
            # Mask garbage tail rows of a partial row tile (select discards
            # any NaN/Inf coming from padded data). Only traced when needed.
            row_ids = i * tile_n + lax.broadcasted_iota(
                jnp.int32, row_rmse.shape, 0)
            row_rmse = jnp.where(row_ids < n_rows, row_rmse, 0.0)
        partial = jnp.sum(row_rmse)                     # scalar partial for tile i
        out_ref[...] = jnp.broadcast_to(partial, out_ref.shape)

    if n_d_tiles == 1:
        # Fast path: full D in the block, no accumulator scratch needed.
        finalize(jnp.sum(dsq, axis=1, keepdims=True))
    else:
        j = pl.program_id(1)
        if n_cols % tile_d != 0:
            # Mask garbage tail columns of the last (padded) D chunk.
            col_ids = j * tile_d + lax.broadcasted_iota(jnp.int32, dsq.shape, 1)
            dsq = jnp.where(col_ids < n_cols, dsq, 0.0)
        part = jnp.sum(dsq, axis=1, keepdims=True)      # (tile_n, 1)
        acc_ref = scratch[0]

        @pl.when(j == 0)
        def _():
            acc_ref[...] = jnp.zeros_like(acc_ref)

        acc_ref[...] += part

        @pl.when(j == n_d_tiles - 1)
        def _():
            finalize(acc_ref[...])


def rmse_loss(yhat: jax.Array, y: jax.Array) -> jax.Array:
    """RMSELoss forward. yhat, y: (N, D). Returns scalar float32."""
    assert yhat.shape == y.shape and yhat.ndim == 2
    n, d = yhat.shape
    itemsize = jnp.dtype(yhat.dtype).itemsize

    tile_n, tile_d, bufs = _pick_tiles(n, d, itemsize)
    num_row_tiles = -(-n // tile_n)
    n_d_tiles = -(-d // tile_d)
    total_steps = num_row_tiles * n_d_tiles
    use_bufs = bufs if total_steps >= bufs else 2       # no deep pipeline on tiny grids

    scratch = []
    if n_d_tiles > 1:
        scratch.append(pltpu.VMEM((tile_n, 1), jnp.float32))

    # VMEM actually needed: input pipeline buffers + (lane-padded) accumulator
    # + output block buffers + compiler scratch headroom.
    block_bytes = tile_n * tile_d * itemsize
    vmem_limit = (2 * use_bufs * block_bytes
                  + (tile_n * 512 if n_d_tiles > 1 else 0)
                  + 2 * 8 * 128 * 4
                  + (4 << 20))
    vmem_limit = int(min(max(vmem_limit, 32 << 20),
                         min(_vmem_capacity_bytes(), 128 << 20)))

    kernel = functools.partial(
        _rmse_partial_kernel, n_rows=n, n_cols=d, inv_d=1.0 / d,
        tile_n=tile_n, tile_d=tile_d, n_d_tiles=n_d_tiles)

    partials = pl.pallas_call(
        kernel,
        out_shape=jax.ShapeDtypeStruct((num_row_tiles, 8, 128), jnp.float32),
        grid_spec=pltpu.PrefetchScalarGridSpec(
            num_scalar_prefetch=0,
            grid=(num_row_tiles, n_d_tiles),
            in_specs=[
                _in_spec((tile_n, tile_d), lambda i, j: (i, j), use_bufs),
                _in_spec((tile_n, tile_d), lambda i, j: (i, j), use_bufs),
            ],
            # One (1, 8, 128) partial block per row tile; constant across the D
            # (reduction) axis -> written back once per row tile.
            out_specs=pl.BlockSpec((1, 8, 128), lambda i, j: (i, 0, 0)),
            scratch_shapes=scratch,
        ),
        compiler_params=pltpu.CompilerParams(
            dimension_semantics=("parallel", "arbitrary"),
            vmem_limit_bytes=vmem_limit,
        ),
    )(yhat, y)

    # One scalar per row tile lives at [:, 0, 0]; final mean over N in XLA.
    return jnp.sum(partials[:, 0, 0]) / jnp.float32(n)


def rmse_loss_ref(yhat: jax.Array, y: jax.Array) -> jax.Array:
    diff = yhat.astype(jnp.float32) - y.astype(jnp.float32)
    mse_value = jnp.mean(diff * diff, axis=1) + 1e-08
    return jnp.mean(jnp.sqrt(mse_value))


if __name__ == "__main__":
    key = jax.random.PRNGKey(0)
    k1, k2, k3, k4 = jax.random.split(key, 4)

    # Primary small check: N=16 batch rows, D=32 features.
    N, D = 16, 32
    yhat = jax.random.normal(k1, (N, D), dtype=jnp.float32)
    y = jax.random.normal(k2, (N, D), dtype=jnp.float32)
    loss = rmse_loss(yhat, y)
    jax.block_until_ready(loss)
    ref = rmse_loss_ref(yhat, y)
    assert jnp.allclose(loss, ref, rtol=1e-5, atol=1e-6), (loss, ref)

    # Odd (non-multiple-of-8) shapes exercise the full-extent row-tile path.
    yhat2 = jax.random.normal(k3, (13, 40), dtype=jnp.float32)
    y2 = jax.random.normal(k4, (13, 40), dtype=jnp.float32)
    loss2 = rmse_loss(yhat2, y2)
    jax.block_until_ready(loss2)
    ref2 = rmse_loss_ref(yhat2, y2)
    assert jnp.allclose(loss2, ref2, rtol=1e-5, atol=1e-6), (loss2, ref2)

    print("KERNEL_OK")
</pallas_src>

<mosaic_0001>
module attributes {stable_mosaic.version = 11 : i64} {
  func.func @_rmse_partial_kernel(%arg0: i32, %arg1: i32, %arg2: memref<16x32xf32, #tpu.memory_space<vmem>>, %arg3: memref<16x32xf32, #tpu.memory_space<vmem>>, %arg4: memref<1x8x128xf32, #tpu.memory_space<vmem>>) attributes {dimension_semantics = [#tpu.dimension_semantics<parallel>, #tpu.dimension_semantics<arbitrary>], iteration_bounds = array<i64: 1, 1>, scalar_prefetch = 0 : i64, scratch_operands = 0 : i64, tpu.core_type = #tpu.core_type<tc>, window_params = [{transform_indices = @transform_0, window_bounds = array<i64: 16, 32>}, {transform_indices = @transform_1, window_bounds = array<i64: 16, 32>}, {transform_indices = @transform_2, window_bounds = array<i64: 1, 8, 128>}]} {
    %c0 = arith.constant 0 : index
    %c0_0 = arith.constant 0 : index
    %0 = vector.load %arg2[%c0, %c0_0] : memref<16x32xf32, #tpu.memory_space<vmem>>, vector<16x32xf32>
    %c0_1 = arith.constant 0 : index
    %c0_2 = arith.constant 0 : index
    %1 = vector.load %arg3[%c0_1, %c0_2] : memref<16x32xf32, #tpu.memory_space<vmem>>, vector<16x32xf32>
    %2 = arith.subf %0, %1 : vector<16x32xf32>
    %3 = arith.mulf %2, %2 : vector<16x32xf32>
    %cst = arith.constant dense<0.000000e+00> : vector<16xf32>
    %4 = vector.multi_reduction <add>, %3, %cst [1] : vector<16x32xf32> to vector<16xf32>
    %5 = vector.shape_cast %4 : vector<16xf32> to vector<16x1xf32>
    %cst_3 = arith.constant 3.125000e-02 : f32
    %6 = vector.broadcast %cst_3 : f32 to vector<16x1xf32>
    %7 = arith.mulf %5, %6 : vector<16x1xf32>
    %cst_4 = arith.constant 9.99999993E-9 : f32
    %8 = vector.broadcast %cst_4 : f32 to vector<16x1xf32>
    %9 = arith.addf %7, %8 : vector<16x1xf32>
    %10 = math.sqrt %9 : vector<16x1xf32>
    %11 = vector.shape_cast %10 : vector<16x1xf32> to vector<1x16x1xf32>
    %cst_5 = arith.constant dense<0.000000e+00> : vector<1xf32>
    %12 = vector.multi_reduction <add>, %11, %cst_5 [1, 2] : vector<1x16x1xf32> to vector<1xf32>
    %13 = vector.shape_cast %12 : vector<1xf32> to vector<1x1x1xf32>
    %14 = vector.extract %13[0, 0, 0] : f32 from vector<1x1x1xf32>
    %15 = vector.broadcast %14 : f32 to vector<1x8x128xf32>
    %c0_6 = arith.constant 0 : index
    %c0_7 = arith.constant 0 : index
    %c0_8 = arith.constant 0 : index
    %16 = vector.load %arg4[%c0_6, %c0_7, %c0_8] : memref<1x8x128xf32, #tpu.memory_space<vmem>>, vector<1x8x128xf32>
    tpu.vector_store %arg4[%c0_6, %c0_7, %c0_8], %15 {strides = array<i32>} : memref<1x8x128xf32, #tpu.memory_space<vmem>>, vector<1x8x128xf32>,
    return
  }
  func.func @transform_0(%arg0: i32, %arg1: i32) -> (i32, i32) {
    %c0_i32 = arith.constant 0 : i32
    return %arg0, %arg1 : i32, i32
  }
  func.func @transform_1(%arg0: i32, %arg1: i32) -> (i32, i32) {
    %c0_i32 = arith.constant 0 : i32
    return %arg0, %arg1 : i32, i32
  }
  func.func @transform_2(%arg0: i32, %arg1: i32) -> (i32, i32, i32) {
    %c0_i32 = arith.constant 0 : i32
    %c0_i32_0 = arith.constant 0 : i32
    %c0_i32_1 = arith.constant 0 : i32
    return %arg0, %c0_i32, %c0_i32_0 : i32, i32, i32
  }
}

</mosaic_0001>

<bundles_post_ra>
// kernel: tpu_custom_call.1
= control target key start
LH: loop header
LB: loop body
LE: loop exit
PB: predicated region body
PF: predicated region fallthrough
CT: control target
= control target key end

     0   :  { %7 = vsyncpa [#allocation3], 0  ;;  %s243_s0 = inlined_call_operand.hbm [shape: f32[16,32], index: 0, kind: input, shape index: {}]   ;;  %s244_s1 = inlined_call_operand.hbm [shape: f32[16,32], index: 1, kind: input, shape index: {}]   ;;  %s245_s2 = inlined_call_operand.hbm [shape: f32[1,8,128], index: 2, kind: output, shape index: {}]  }
   0x1   :  { %8 = vsyncpa [#allocation6], 0 }
   0x2   :  { %9 = vsyncpa [#allocation4], 0  ;;  %s187_s9 = smov [#allocation2]   ;;  %s115_s13 = scalar_lea.hbm %s243_s0, 256 }
   0x3   :  { %s15_s10 = sshll.u32 %s187_s9, 4  ;;  %p116_p0 = scmp.ne.s32.totalorder %s243_s0, %s115_s13  ;;  %s16_s10 = int_to_ptr.vmem [resolvable:$true] %s15_s10 }
   0x4   :  { %p119_p1 = scmp.lt.u32.totalorder %s115_s13, %s243_s0 }
   0x6   :  { %p121_p2 = pnand %p119_p1, %p116_p0 }
   0x8   :  { %124 = shalt.err (!%p121_p2)
}
   0x9   :  { %s125_s18 = scalar_lea.vmem %s16_s10, 256  ;;  %p130_p4 = scmp.lt.s32.totalorder %s16_s10, %s16_s10 }
   0xa   :  { %p126_p3 = scmp.ne.s32.totalorder %s16_s10, %s125_s18  ;;  %p131_p5 = scmp.lt.s32.totalorder %s125_s18, %s125_s18 }
   0xc   :  { %p132_p6 = por %p131_p5, %p130_p4 }
   0xe   :  { %p133_p7 = pnand %p132_p6, %p126_p3 }
  0x10   :  { %136 = shalt.err (!%p133_p7)
}
  0x11   :  { %s188_s19 = smov 128   ;;  %s189_s20 = smov 8  }
  0x12   :  { %21 = dma.hbm_to_vmem [thread:$0]  %s243_s0, 256, %s16_s10, [#allocation3], %s188_s19, %s188_s19, %s189_s20  }
  0x13   :  { %s190_s23 = smov [#allocation5]   ;;  %s137_s27 = scalar_lea.hbm %s244_s1, 256 }
  0x14   :  { %s27_s24 = sshll.u32 %s190_s23, 4  ;;  %p138_p8 = scmp.ne.s32.totalorder %s244_s1, %s137_s27  ;;  %s28_s24 = int_to_ptr.vmem [resolvable:$true] %s27_s24 }
  0x15   :  { %p141_p9 = scmp.lt.u32.totalorder %s137_s27, %s244_s1 }
  0x17   :  { %p143_p10 = pnand %p141_p9, %p138_p8 }
  0x19   :  { %146 = shalt.err (!%p143_p10)
}
  0x1a   :  { %s147_s4 = scalar_lea.vmem %s28_s24, 256  ;;  %p152_p12 = scmp.lt.s32.totalorder %s28_s24, %s28_s24 }
  0x1b   :  { %p148_p11 = scmp.ne.s32.totalorder %s28_s24, %s147_s4  ;;  %p153_p13 = scmp.lt.s32.totalorder %s147_s4, %s147_s4 }
  0x1d   :  { %p154_p0 = por %p153_p13, %p152_p12 }
  0x1f   :  { %p155_p1 = pnand %p154_p0, %p148_p11 }
  0x21   :  { %158 = shalt.err (!%p155_p1)
}
  0x22   :  { %33 = dma.hbm_to_vmem [thread:$0]  %s244_s1, 256, %s28_s24, [#allocation6], %s188_s19, %s188_s19, %s189_s20  }
  0x23   :  { %181 = dma.done.wait [#allocation3], 256  }
  0x24   :  { %182 = vsyncadd [#allocation3], 4294967040 }
  0x25   :  { %183 = dma.done.wait [#allocation6], 256  }
  0x26   :  { %184 = vsyncadd [#allocation6], 4294967040  ;;  %v40_v0 = vld [vmem:[#allocation2] sm:$0xff]  ;;  %v42_v1 = vld [vmem:[#allocation5] sm:$0xff]  ;;  %vm48_vm0 = vcmask 261120   ;;  %vm73_vm4 = vcmask 7168  }
  0x27   :  { %v41_v2 = vld [vmem:[#allocation2 + $0x8] sm:$0xff]  ;;  %v44_v3 = vsub.f32 %v40_v0, %v42_v1  ;;  %v43_v4 = vld [vmem:[#allocation5 + $0x8] sm:$0xff]  ;;  %s191_s1 = smov [#allocation7]  }
  0x28   :  { %v45_v5 = vsub.f32 %v41_v2, %v43_v4  ;;  %s94_s6 = sshll.u32 %s191_s1, 4  ;;  %s95_s6 = int_to_ptr.vmem [resolvable:$true] %s94_s6 }
  0x29   :  { %v46_v6 = vmul.f32 %v44_v3, %v44_v3  ;;  %s159_s8 = scalar_lea.vmem %s95_s6, 128  ;;  %p164_p3 = scmp.lt.s32.totalorder %s95_s6, %s95_s6 }
  0x2a   :  { %v47_v7 = vmul.f32 %v45_v5, %v45_v5  ;;  %p160_p2 = scmp.ne.s32.totalorder %s95_s6, %s159_s8  ;;  %p165_p4 = scmp.lt.s32.totalorder %s159_s8, %s159_s8 }
  0x2b   :  { %v49_v8 = vsel %vm48_vm0, %v46_v6, 0.0 }
  0x2c   :  { %50 = vadd.xlane.f32.xlu0 %v49_v8  ;;  %v52_v9 = vsel %vm48_vm0, %v47_v7, 0.0  ;;  %p166_p5 = por %p165_p4, %p164_p3 }
  0x2e   :  { %p167_p6 = pnand %p166_p5, %p160_p2 }
  0x30   :  { %53 = vadd.xlane.f32.xlu0 %v52_v9 }
  0xb9   :  { %v51_v10 = vpop.xlane.xlu0 %50 }
  0xba   :  { %v55_v11 = vmul.f32 0.03125, %v51_v10 }
  0xbc   :  { %v57_v12 = vadd.f32 1e-08, %v55_v11 }
  0xbd   :  { %v54_v13 = vpop.xlane.xlu0 %53 }
  0xbe   :  { %111 = vrsqrt.f32 %v57_v12  ;;  %v56_v14 = vmul.f32 0.03125, %v54_v13  ;;  %vm61_vm1 = vcmp.eq.f32.partialorder %v57_v12, inf  ;;  %v64_v20 = vand.u32 2147483648, %v57_v12 }
  0xbf   :  { %vm63_vm2 = vcmp.eq.f32.partialorder %v57_v12, 0.0 }
  0xc0   :  { %v58_v15 = vadd.f32 1e-08, %v56_v14 }
  0xc2   :  { %113 = vrsqrt.f32 %v58_v15  ;;  %vm68_vm3 = vcmp.eq.f32.partialorder %v58_v15, inf  ;;  %v71_v23 = vand.u32 2147483648, %v58_v15  ;;  %vm70_vm5 = vcmp.eq.f32.partialorder %v58_v15, 0.0 }
  0xc8   :  { %v112_v16 = vpop.eup %111 }
  0xc9   :  { %v60_v17 = vmul.f32 %v112_v16, %v57_v12 }
  0xcb   :  { %v62_v18 = vsel %vm61_vm1, %v57_v12, %v60_v17 }
  0xcc   :  { %v114_v19 = vpop.eup %113  ;;  %v65_v22 = vsel %vm63_vm2, %v64_v20, %v62_v18 }
  0xcd   :  { %v67_v21 = vmul.f32 %v114_v19, %v58_v15  ;;  %v74_v26 = vsel %vm73_vm4, %v65_v22, 0.0 }
  0xcf   :  { %v69_v24 = vsel %vm68_vm3, %v58_v15, %v67_v21 }
  0xd0   :  { %v72_v25 = vsel %vm70_vm5, %v71_v23, %v69_v24 }
  0xd1   :  { %v75_v27 = vsel %vm73_vm4, %v72_v25, 0.0 }
  0xd2   :  { %v76_v28 = vadd.f32 %v75_v27, %v74_v26 }
  0xd4   :  { %77 = vadd.xlane.f32.xlu1 %v76_v28 }
 0x161   :  { %v78_v29 = vpop.xlane.xlu1 %77 }
 0x162   :  { %v79_v30 = vrot.slane %v78_v29, 4 }
 0x164   :  { %v80_v31 = vadd.f32 %v79_v30, %v78_v29 }
 0x166   :  { %v81_v32 = vrot.slane %v80_v31, 2 }
 0x168   :  { %v82_v33 = vadd.f32 %v81_v32, %v80_v31 }
 0x16a   :  { %v83_v34 = vrot.slane %v82_v33, 1 }
 0x16c   :  { %v84_v35 = vadd.f32 %v83_v34, %v82_v33 }
 0x16e   :  { %104 = vpush %v84_v35 }
 0x19f   :  { %s105_s7 = spop %104 }
 0x1a0   :  { %v86_v36 = vstv %s105_s7 }
 0x1a1   :  { %87 = vst [vmem:[#allocation7] sm:$0xff] %v86_v36 }
 0x1a2   :  { %170 = shalt.err (!%p167_p6)
}
 0x1a3   :  { %s171_s11 = scalar_lea.hbm %s245_s2, 128 }
 0x1a4   :  { %p172_p7 = scmp.ne.s32.totalorder %s245_s2, %s171_s11  ;;  %p175_p8 = scmp.lt.u32.totalorder %s171_s11, %s245_s2 }
 0x1a6   :  { %p177_p9 = pnand %p175_p8, %p172_p7 }
 0x1a8   :  { %180 = shalt.err (!%p177_p9)
}
 0x1a9   :  { %97 = dma.vmem_to_hbm [thread:$0]  %s95_s6, 128, %s245_s2, [#allocation4]  }
 0x1aa   :  { %185 = dma.done.wait [#allocation4], 128  }
 0x1ab   :  { %186 = vsyncadd [#allocation4], 4294967168 }
 0x1ac   :  { %101 = vsyncpa [#allocation3], 1 }
 0x1ad   :  { %102 = vsyncpa [#allocation6], 1 }
 0x1ae   :  { %103 = vsyncpa [#allocation4], 1 }

</bundles_post_ra>
